<compile_context>
chip_gen: v7x
topology: tpu7x:2x2x1
jax: 0.10.0
libtpu: 0.0.40
codegen_flags: <defaults>
</compile_context>

<pallas_src>
import functools
import math

import jax
import jax.numpy as jnp
from jax.experimental import pallas as pl
from jax.experimental.pallas import tpu as pltpu


# ----------------------------------------------------------------------------
# helpers
# ----------------------------------------------------------------------------
def _pick_tile(dim, cap, step):
    """Largest tile <= cap (multiple of `step`) that evenly divides dim, else full dim."""
    if dim <= cap:
        return dim
    t = (cap // step) * step
    while t >= step:
        if dim % t == 0:
            return t
        t -= step
    return dim  # fallback: full dim (legal; may use more VMEM for odd sizes)


# ----------------------------------------------------------------------------
# Tiled matmul + bias (+ optional ReLU).  Operands stay in their native dtype
# (bf16 on the fast path); accumulation is f32 in VMEM scratch.
# ----------------------------------------------------------------------------
def _matmul_kernel(x_ref, w_ref, b_ref, o_ref, acc_ref, *, activation, k_axis):
    k = pl.program_id(k_axis)

    @pl.when(k == 0)
    def _():
        acc_ref[...] = jnp.zeros_like(acc_ref)

    acc_ref[...] += jnp.dot(x_ref[...], w_ref[...],
                            preferred_element_type=jnp.float32)

    @pl.when(k == pl.num_programs(k_axis) - 1)
    def _():
        y = acc_ref[...] + b_ref[...].astype(jnp.float32)
        if activation == "relu":
            y = jnp.maximum(y, 0.0)
        o_ref[...] = y.astype(o_ref.dtype)


def pallas_linear(x, w, b, *, activation=None, out_dtype=None,
                  tm_cap=256, tn_cap=512, tk_cap=1024):
    """x: (M, K), w: (K, N) [already transposed], b: (N,) or (1, N) -> (M, N)."""
    M, K = x.shape
    K2, N = w.shape
    assert K == K2
    out_dtype = out_dtype or x.dtype
    tm = _pick_tile(M, tm_cap, 8)
    tn = _pick_tile(N, tn_cap, 128)
    tk = _pick_tile(K, tk_cap, 128)
    grid = (M // tm, N // tn, K // tk)
    return pl.pallas_call(
        functools.partial(_matmul_kernel, activation=activation, k_axis=2),
        out_shape=jax.ShapeDtypeStruct((M, N), out_dtype),
        grid=grid,
        in_specs=[
            pl.BlockSpec((tm, tk), lambda i, j, k: (i, k)),
            pl.BlockSpec((tk, tn), lambda i, j, k: (k, j)),
            pl.BlockSpec((1, tn), lambda i, j, k: (0, j)),
        ],
        out_specs=pl.BlockSpec((tm, tn), lambda i, j, k: (i, j)),
        scratch_shapes=[pltpu.VMEM((tm, tn), jnp.float32)],
        compiler_params=pltpu.CompilerParams(
            dimension_semantics=("parallel", "parallel", "arbitrary")),
    )(x, w, b.reshape(1, N))


def pallas_qkv_linear(x, w3, b3, *, out_dtype=None,
                      tm_cap=256, tn_cap=512, tk_cap=1024):
    """Fused QKV projection.  x: (M, E), w3: (3, E, E), b3: (3, 1, E) -> (3, M, E)."""
    M, K = x.shape
    G, K2, N = w3.shape
    assert K == K2 and G == 3
    out_dtype = out_dtype or x.dtype
    tm = _pick_tile(M, tm_cap, 8)
    tn = _pick_tile(N, tn_cap, 128)
    tk = _pick_tile(K, tk_cap, 128)
    grid = (G, M // tm, N // tn, K // tk)
    return pl.pallas_call(
        functools.partial(_matmul_kernel, activation=None, k_axis=3),
        out_shape=jax.ShapeDtypeStruct((G, M, N), out_dtype),
        grid=grid,
        in_specs=[
            pl.BlockSpec((tm, tk), lambda g, i, j, k: (i, k)),
            pl.BlockSpec((None, tk, tn), lambda g, i, j, k: (g, k, j)),
            pl.BlockSpec((None, 1, tn), lambda g, i, j, k: (g, 0, j)),
        ],
        out_specs=pl.BlockSpec((None, tm, tn), lambda g, i, j, k: (g, i, j)),
        scratch_shapes=[pltpu.VMEM((tm, tn), jnp.float32)],
        compiler_params=pltpu.CompilerParams(
            dimension_semantics=("parallel", "parallel", "parallel", "arbitrary")),
    )(x, w3, b3)


# ----------------------------------------------------------------------------
# Tiled matmul + bias + residual-add + LayerNorm (fused epilogue).
# Requires the full N extent (= E) to be a single tile (needed for LN anyway).
# ----------------------------------------------------------------------------
def _matmul_add_ln_kernel(x_ref, w_ref, b_ref, r_ref, g_ref, bln_ref, o_ref,
                          acc_ref, *, eps):
    k = pl.program_id(1)

    @pl.when(k == 0)
    def _():
        acc_ref[...] = jnp.zeros_like(acc_ref)

    acc_ref[...] += jnp.dot(x_ref[...], w_ref[...],
                            preferred_element_type=jnp.float32)

    @pl.when(k == pl.num_programs(1) - 1)
    def _():
        y = (acc_ref[...] + b_ref[...].astype(jnp.float32)
             + r_ref[...].astype(jnp.float32))
        mu = jnp.mean(y, axis=-1, keepdims=True)
        yc = y - mu
        var = jnp.mean(yc * yc, axis=-1, keepdims=True)
        yn = yc * jax.lax.rsqrt(var + eps)
        yn = yn * g_ref[...].astype(jnp.float32) + bln_ref[...].astype(jnp.float32)
        o_ref[...] = yn.astype(o_ref.dtype)


def pallas_linear_add_ln(x, w, b, residual, gamma, beta, *, eps=1e-5,
                         out_dtype=None, tm_cap=256, tk_cap=1024):
    """LayerNorm(x @ w + b + residual) * gamma + beta.  x: (M,K), w: (K,N)."""
    M, K = x.shape
    K2, N = w.shape
    assert K == K2
    assert residual.shape == (M, N)
    out_dtype = out_dtype or x.dtype
    tm = _pick_tile(M, tm_cap, 8)
    tk = _pick_tile(K, tk_cap, 128)
    grid = (M // tm, K // tk)
    return pl.pallas_call(
        functools.partial(_matmul_add_ln_kernel, eps=eps),
        out_shape=jax.ShapeDtypeStruct((M, N), out_dtype),
        grid=grid,
        in_specs=[
            pl.BlockSpec((tm, tk), lambda i, k: (i, k)),
            pl.BlockSpec((tk, N), lambda i, k: (k, 0)),
            pl.BlockSpec((1, N), lambda i, k: (0, 0)),
            pl.BlockSpec((tm, N), lambda i, k: (i, 0)),
            pl.BlockSpec((1, N), lambda i, k: (0, 0)),
            pl.BlockSpec((1, N), lambda i, k: (0, 0)),
        ],
        out_specs=pl.BlockSpec((tm, N), lambda i, k: (i, 0)),
        scratch_shapes=[pltpu.VMEM((tm, N), jnp.float32)],
        compiler_params=pltpu.CompilerParams(
            dimension_semantics=("parallel", "arbitrary")),
    )(x, w, b.reshape(1, N), residual, gamma.reshape(1, N), beta.reshape(1, N))


# ----------------------------------------------------------------------------
# Multi-head scaled-dot-product attention.  Grid = (B,); all heads are handled
# inside one grid step from lane-dense (S, E) tiles; causal mask via iota.
# ----------------------------------------------------------------------------
def _attn_kernel(*refs, n_heads, scale, causal, has_attn_bias, mask_value=-1e30):
    if has_attn_bias:
        q_ref, k_ref, v_ref, pad_ref, am_ref, o_ref = refs
    else:
        q_ref, k_ref, v_ref, pad_ref, o_ref = refs
        am_ref = None

    Sq, E = q_ref.shape
    Sk = k_ref.shape[0]
    Dh = E // n_heads

    q = q_ref[...]                                   # (Sq, E), compute dtype
    kk = k_ref[...]                                  # (Sk, E)
    v = v_ref[...]                                   # (Sk, E)

    bias = pad_ref[...].astype(jnp.float32)          # (1, Sk) additive pad bias
    if am_ref is not None:
        bias = bias + am_ref[...].astype(jnp.float32)   # (Sq, Sk)
    if causal:
        qi = jax.lax.broadcasted_iota(jnp.int32, (Sq, Sk), 0)
        ki = jax.lax.broadcasted_iota(jnp.int32, (Sq, Sk), 1)
        bias = bias + jnp.where(ki > qi, jnp.float32(mask_value), jnp.float32(0.0))

    outs = []
    for h in range(n_heads):                         # static unroll over heads
        sl = slice(h * Dh, (h + 1) * Dh)
        s = jax.lax.dot_general(q[:, sl], kk[:, sl], (((1,), (1,)), ((), ())),
                                preferred_element_type=jnp.float32)
        s = s * scale + bias
        m = jnp.max(s, axis=-1, keepdims=True)
        p = jnp.exp(s - m)
        l = jnp.sum(p, axis=-1, keepdims=True)
        p = p * pl.reciprocal(l, approx=True)        # EUP, off the VALU critical path
        outs.append(jnp.dot(p.astype(v.dtype), v[:, sl],
                            preferred_element_type=jnp.float32))
    o_ref[...] = jnp.concatenate(outs, axis=-1).astype(o_ref.dtype)   # lane-dense (Sq, E)


def pallas_attention(q_arr, k_arr, v_arr, pad_bias, attn_bias, *, n_heads, scale,
                     causal, fused_qkv, out_dtype):
    """fused_qkv=True: q_arr/k_arr/v_arr are the SAME (3, B, S, E) array (self-attn);
       otherwise each is a separate (B, S, E) array."""
    if fused_qkv:
        _, B, Sq, E = q_arr.shape
        Sk = Sq
        q_spec = pl.BlockSpec((None, None, Sq, E), lambda b: (0, b, 0, 0))
        k_spec = pl.BlockSpec((None, None, Sk, E), lambda b: (1, b, 0, 0))
        v_spec = pl.BlockSpec((None, None, Sk, E), lambda b: (2, b, 0, 0))
    else:
        B, Sq, E = q_arr.shape
        Sk = k_arr.shape[1]
        q_spec = pl.BlockSpec((None, Sq, E), lambda b: (b, 0, 0))
        k_spec = pl.BlockSpec((None, Sk, E), lambda b: (b, 0, 0))
        v_spec = pl.BlockSpec((None, Sk, E), lambda b: (b, 0, 0))

    in_specs = [q_spec, k_spec, v_spec,
                pl.BlockSpec((None, 1, Sk), lambda b: (b, 0, 0))]
    inputs = [q_arr, k_arr, v_arr, pad_bias]
    has_attn_bias = attn_bias is not None
    if has_attn_bias:
        in_specs.append(pl.BlockSpec((None, Sq, Sk), lambda b: (0, 0, 0)))
        inputs.append(attn_bias.reshape(1, Sq, Sk))

    kernel = functools.partial(_attn_kernel, n_heads=n_heads, scale=scale,
                               causal=causal, has_attn_bias=has_attn_bias)
    return pl.pallas_call(
        kernel,
        out_shape=jax.ShapeDtypeStruct((B, Sq, E), out_dtype),
        grid=(B,),
        in_specs=in_specs,
        out_specs=pl.BlockSpec((None, Sq, E), lambda b: (b, 0, 0)),
        compiler_params=pltpu.CompilerParams(dimension_semantics=("parallel",)),
    )(*inputs)


# ----------------------------------------------------------------------------
# Parameter preparation (done ONCE): transpose / stack / cast weights.
# ----------------------------------------------------------------------------
def prepare_params(params, *, compute_dtype=jnp.bfloat16):
    w_in = params["in_proj_weight"]          # (3E, E) PyTorch layout
    b_in = params["in_proj_bias"]            # (3E,)
    E = w_in.shape[1]
    wq, wk, wv = w_in[:E], w_in[E:2 * E], w_in[2 * E:]
    bq, bk, bv = b_in[:E], b_in[E:2 * E], b_in[2 * E:]
    return {
        "w_qkv": jnp.stack([wq.T, wk.T, wv.T]).astype(compute_dtype),      # (3, E, E)
        "b_qkv": jnp.stack([bq, bk, bv]).reshape(3, 1, E).astype(jnp.float32),
        "w_out": params["out_proj_weight"].T.astype(compute_dtype),        # (E, E)
        "b_out": params["out_proj_bias"].astype(jnp.float32),
        "w_ff1": params["ff1_weight"].T.astype(compute_dtype),             # (E, FF)
        "b_ff1": params["ff1_bias"].astype(jnp.float32),
        "w_ff2": params["ff2_weight"].T.astype(compute_dtype),             # (FF, E)
        "b_ff2": params["ff2_bias"].astype(jnp.float32),
        "ln_weight": params["ln_weight"].astype(jnp.float32),
        "ln_bias": params["ln_bias"].astype(jnp.float32),
    }


# ----------------------------------------------------------------------------
# Full TransformerBlock forward (eval mode)
# ----------------------------------------------------------------------------
def transformer_block_forward(query, key, value, tgt_padding_mask,
                              tgt_attention_mask, prepared, *, n_heads,
                              causal=True, ln_eps=1e-5,
                              compute_dtype=jnp.bfloat16):
    """query/key/value: (B, S, E) (batch_first).  Returns (B, Sq, E).
    When causal=True the causal attention mask is built in-kernel and the
    tgt_attention_mask argument (assumed to be the standard causal mask) is
    not read."""
    B, Sq, E = query.shape
    Sk = key.shape[1]
    Dh = E // n_heads
    scale = 1.0 / math.sqrt(Dh)

    self_attn = (query is key) and (key is value)
    xq2d = query.reshape(B * Sq, E).astype(compute_dtype)

    if self_attn:
        qkv = pallas_qkv_linear(xq2d, prepared["w_qkv"], prepared["b_qkv"],
                                out_dtype=compute_dtype)          # (3, B*Sq, E)
        qkv = qkv.reshape(3, B, Sq, E)                            # free reshape
        q_arr = k_arr = v_arr = qkv
    else:
        xk2d = key.reshape(B * Sk, E).astype(compute_dtype)
        xv2d = value.reshape(B * Sk, E).astype(compute_dtype)
        q_arr = pallas_linear(xq2d, prepared["w_qkv"][0], prepared["b_qkv"][0],
                              out_dtype=compute_dtype).reshape(B, Sq, E)
        k_arr = pallas_linear(xk2d, prepared["w_qkv"][1], prepared["b_qkv"][1],
                              out_dtype=compute_dtype).reshape(B, Sk, E)
        v_arr = pallas_linear(xv2d, prepared["w_qkv"][2], prepared["b_qkv"][2],
                              out_dtype=compute_dtype).reshape(B, Sk, E)

    # tiny mask glue: (B, 1, Sk) additive key-padding bias only
    if tgt_padding_mask is not None:
        pm = tgt_padding_mask
        if pm.dtype == jnp.bool_:
            pad_bias = jnp.where(pm, jnp.float32(-1e30), jnp.float32(0.0))
        else:
            pad_bias = pm.astype(jnp.float32)
        pad_bias = pad_bias.reshape(B, 1, Sk)
    else:
        pad_bias = jnp.zeros((B, 1, Sk), jnp.float32)

    attn_bias = None
    if (not causal) and (tgt_attention_mask is not None):
        am = tgt_attention_mask
        if am.dtype == jnp.bool_:
            am = jnp.where(am, jnp.float32(-1e30), jnp.float32(0.0))
        attn_bias = am.astype(jnp.float32)

    attn = pallas_attention(q_arr, k_arr, v_arr, pad_bias, attn_bias,
                            n_heads=n_heads, scale=scale, causal=causal,
                            fused_qkv=self_attn, out_dtype=compute_dtype)  # (B,Sq,E)

    # TODO(synk): nn.Dropout is identity in eval mode; training-mode dropout omitted.
    # out_proj + residual(query) + LayerNorm, fused epilogue
    out_norm = pallas_linear_add_ln(
        attn.reshape(B * Sq, E), prepared["w_out"], prepared["b_out"],
        query.reshape(B * Sq, E), prepared["ln_weight"], prepared["ln_bias"],
        eps=ln_eps, out_dtype=compute_dtype)

    # feed-forward: Linear -> ReLU, then Linear + residual(out_norm) + LayerNorm fused
    h = pallas_linear(out_norm, prepared["w_ff1"], prepared["b_ff1"],
                      activation="relu", out_dtype=compute_dtype)
    out = pallas_linear_add_ln(
        h, prepared["w_ff2"], prepared["b_ff2"],
        out_norm, prepared["ln_weight"], prepared["ln_bias"],
        eps=ln_eps, out_dtype=query.dtype)
    return out.reshape(B, Sq, E)


# ----------------------------------------------------------------------------
# Pure-JAX f32 reference (PyTorch semantics) for correctness check
# ----------------------------------------------------------------------------
def reference_block(query, key, value, pad_mask, attn_mask, params, *,
                    n_heads, ln_eps=1e-5):
    B, Sq, E = query.shape
    Sk = key.shape[1]
    Dh = E // n_heads
    w_in, b_in = params["in_proj_weight"], params["in_proj_bias"]
    wq, wk, wv = w_in[:E], w_in[E:2 * E], w_in[2 * E:]
    bq, bk, bv = b_in[:E], b_in[E:2 * E], b_in[2 * E:]

    q = (query @ wq.T + bq).reshape(B, Sq, n_heads, Dh).transpose(0, 2, 1, 3)
    k = (key @ wk.T + bk).reshape(B, Sk, n_heads, Dh).transpose(0, 2, 1, 3)
    v = (value @ wv.T + bv).reshape(B, Sk, n_heads, Dh).transpose(0, 2, 1, 3)

    bias = (jnp.where(attn_mask, -1e9, 0.0).astype(jnp.float32)[None, None]
            + jnp.where(pad_mask, -1e9, 0.0).astype(jnp.float32)[:, None, None, :])
    s = jnp.einsum("bhqd,bhkd->bhqk", q, k) / math.sqrt(Dh) + bias
    p = jax.nn.softmax(s, axis=-1)
    attn = jnp.einsum("bhqk,bhkd->bhqd", p, v).transpose(0, 2, 1, 3).reshape(B, Sq, E)
    out_attn = attn @ params["out_proj_weight"].T + params["out_proj_bias"]

    def ln(x):
        mu = x.mean(-1, keepdims=True)
        var = ((x - mu) ** 2).mean(-1, keepdims=True)
        return ((x - mu) / jnp.sqrt(var + ln_eps)) * params["ln_weight"] + params["ln_bias"]

    out_norm = ln(out_attn + query)
    h = jax.nn.relu(out_norm @ params["ff1_weight"].T + params["ff1_bias"])
    out_ff = h @ params["ff2_weight"].T + params["ff2_bias"]
    return ln(out_norm + out_ff)


# ----------------------------------------------------------------------------
if __name__ == "__main__":
    B, S, E, H, FF = 2, 8, 32, 4, 2048
    keys = jax.random.split(jax.random.PRNGKey(0), 12)
    x = jax.random.normal(keys[0], (B, S, E), jnp.float32)

    params = {
        "in_proj_weight": 0.10 * jax.random.normal(keys[1], (3 * E, E), jnp.float32),
        "in_proj_bias":   0.10 * jax.random.normal(keys[2], (3 * E,), jnp.float32),
        "out_proj_weight": 0.10 * jax.random.normal(keys[3], (E, E), jnp.float32),
        "out_proj_bias":   0.10 * jax.random.normal(keys[4], (E,), jnp.float32),
        "ln_weight": jnp.ones((E,), jnp.float32)
                     + 0.10 * jax.random.normal(keys[5], (E,), jnp.float32),
        "ln_bias":   0.10 * jax.random.normal(keys[6], (E,), jnp.float32),
        "ff1_weight": 0.05 * jax.random.normal(keys[7], (FF, E), jnp.float32),
        "ff1_bias":   0.05 * jax.random.normal(keys[8], (FF,), jnp.float32),
        "ff2_weight": 0.05 * jax.random.normal(keys[9], (E, FF), jnp.float32),
        "ff2_bias":   0.05 * jax.random.normal(keys[10], (E,), jnp.float32),
    }

    # causal attention mask (True = disallowed) + key padding (True = padded)
    causal_mask = jnp.triu(jnp.ones((S, S), dtype=bool), k=1)
    pad_mask = jnp.zeros((B, S), dtype=bool).at[1, S - 1].set(True)

    prepared = prepare_params(params, compute_dtype=jnp.bfloat16)
    out = transformer_block_forward(x, x, x, pad_mask, causal_mask, prepared,
                                    n_heads=H, causal=True,
                                    compute_dtype=jnp.bfloat16)
    out = jax.block_until_ready(out)

    ref = reference_block(x, x, x, pad_mask, causal_mask, params, n_heads=H)

    assert out.shape == (B, S, E)
    assert bool(jnp.isfinite(out).all())
    # bf16 MXU operands (f32 accumulation) vs. full-f32 reference.
    assert jnp.allclose(out, ref, atol=5e-2, rtol=5e-2), \
        float(jnp.max(jnp.abs(out - ref)))

    print("KERNEL_OK")
</pallas_src>

<mosaic_0001>
module attributes {stable_mosaic.version = 11 : i64} {
  func.func @_matmul_kernel(%arg0: i32, %arg1: i32, %arg2: i32, %arg3: i32, %arg4: memref<16x32xbf16, #tpu.memory_space<vmem>>, %arg5: memref<1x32x32xbf16, #tpu.memory_space<vmem>>, %arg6: memref<1x1x32xf32, #tpu.memory_space<vmem>>, %arg7: memref<1x16x32xbf16, #tpu.memory_space<vmem>>, %arg8: memref<16x32xf32, #tpu.memory_space<vmem>>) attributes {dimension_semantics = [#tpu.dimension_semantics<parallel>, #tpu.dimension_semantics<parallel>, #tpu.dimension_semantics<parallel>, #tpu.dimension_semantics<arbitrary>], iteration_bounds = array<i64: 3, 1, 1, 1>, scalar_prefetch = 0 : i64, scratch_operands = 1 : i64, tpu.core_type = #tpu.core_type<tc>, window_params = [{transform_indices = @transform_0, window_bounds = array<i64: 16, 32>}, {transform_indices = @transform_1, window_bounds = array<i64: 1, 32, 32>}, {transform_indices = @transform_2, window_bounds = array<i64: 1, 1, 32>}, {transform_indices = @transform_3, window_bounds = array<i64: 1, 16, 32>}]} {
    %c0_i32 = arith.constant 0 : i32
    %0 = arith.cmpi eq, %arg3, %c0_i32 : i32
    %1 = arith.extui %0 : i1 to i32
    %c0_i32_0 = arith.constant 0 : i32
    %2 = arith.cmpi ne, %1, %c0_i32_0 : i32
    scf.if %2 {
      %cst_11 = arith.constant 0.000000e+00 : f32
      %13 = vector.broadcast %cst_11 : f32 to vector<16x32xf32>
      %c0_12 = arith.constant 0 : index
      %c0_13 = arith.constant 0 : index
      %14 = vector.load %arg8[%c0_12, %c0_13] : memref<16x32xf32, #tpu.memory_space<vmem>>, vector<16x32xf32>
      tpu.vector_store %arg8[%c0_12, %c0_13], %13 {strides = array<i32>} : memref<16x32xf32, #tpu.memory_space<vmem>>, vector<16x32xf32>,
    } else {
    }
    %c0 = arith.constant 0 : index
    %c0_1 = arith.constant 0 : index
    %3 = vector.load %arg8[%c0, %c0_1] : memref<16x32xf32, #tpu.memory_space<vmem>>, vector<16x32xf32>
    %c0_2 = arith.constant 0 : index
    %c0_3 = arith.constant 0 : index
    %4 = vector.load %arg4[%c0_2, %c0_3] : memref<16x32xbf16, #tpu.memory_space<vmem>>, vector<16x32xbf16>
    %c0_4 = arith.constant 0 : index
    %c0_5 = arith.constant 0 : index
    %c0_6 = arith.constant 0 : index
    %5 = vector.load %arg5[%c0_4, %c0_5, %c0_6] : memref<1x32x32xbf16, #tpu.memory_space<vmem>>, vector<1x32x32xbf16>
    %6 = vector.shape_cast %5 : vector<1x32x32xbf16> to vector<32x32xbf16>
    %cst = arith.constant dense<0.000000e+00> : vector<16x32xf32>
    %7 = tpu.matmul %4, %6, %cst {dimension_numbers = #tpu.dot_dimension_numbers<[1], [0], [0], [1], [0, 0, 1, 1], [], []>} : vector<16x32xbf16>, vector<32x32xbf16>, vector<16x32xf32> -> vector<16x32xf32>
    %8 = arith.addf %3, %7 : vector<16x32xf32>
    %c0_7 = arith.constant 0 : index
    %c0_8 = arith.constant 0 : index
    %9 = vector.load %arg8[%c0_7, %c0_8] : memref<16x32xf32, #tpu.memory_space<vmem>>, vector<16x32xf32>
    tpu.vector_store %arg8[%c0_7, %c0_8], %8 {strides = array<i32>} : memref<16x32xf32, #tpu.memory_space<vmem>>, vector<16x32xf32>,
    %c0_i32_9 = arith.constant 0 : i32
    %10 = arith.cmpi eq, %arg3, %c0_i32_9 : i32
    %11 = arith.extui %10 : i1 to i32
    %c0_i32_10 = arith.constant 0 : i32
    %12 = arith.cmpi ne, %11, %c0_i32_10 : i32
    scf.if %12 {
      %c0_11 = arith.constant 0 : index
      %c0_12 = arith.constant 0 : index
      %13 = vector.load %arg8[%c0_11, %c0_12] : memref<16x32xf32, #tpu.memory_space<vmem>>, vector<16x32xf32>
      %c0_13 = arith.constant 0 : index
      %c0_14 = arith.constant 0 : index
      %c0_15 = arith.constant 0 : index
      %14 = vector.load %arg6[%c0_13, %c0_14, %c0_15] : memref<1x1x32xf32, #tpu.memory_space<vmem>>, vector<1x1x32xf32>
      %15 = vector.shape_cast %14 : vector<1x1x32xf32> to vector<1x32xf32>
      %16 = vector.broadcast %15 : vector<1x32xf32> to vector<16x32xf32>
      %17 = arith.addf %13, %16 : vector<16x32xf32>
      %18 = arith.truncf %17 : vector<16x32xf32> to vector<16x32xbf16>
      %c0_16 = arith.constant 0 : index
      %c0_17 = arith.constant 0 : index
      %c0_18 = arith.constant 0 : index
      %19 = vector.load %arg7[%c0_16, %c0_17, %c0_18] : memref<1x16x32xbf16, #tpu.memory_space<vmem>>, vector<1x16x32xbf16>
      %20 = vector.shape_cast %19 : vector<1x16x32xbf16> to vector<16x32xbf16>
      %21 = vector.shape_cast %18 : vector<16x32xbf16> to vector<1x16x32xbf16>
      tpu.vector_store %arg7[%c0_16, %c0_17, %c0_18], %21 {strides = array<i32>} : memref<1x16x32xbf16, #tpu.memory_space<vmem>>, vector<1x16x32xbf16>,
    } else {
    }
    return
  }
  func.func @transform_0(%arg0: i32, %arg1: i32, %arg2: i32, %arg3: i32) -> (i32, i32) {
    %c0_i32 = arith.constant 0 : i32
    return %arg1, %arg3 : i32, i32
  }
  func.func @transform_1(%arg0: i32, %arg1: i32, %arg2: i32, %arg3: i32) -> (i32, i32, i32) {
    %c0_i32 = arith.constant 0 : i32
    return %arg0, %arg3, %arg2 : i32, i32, i32
  }
  func.func @transform_2(%arg0: i32, %arg1: i32, %arg2: i32, %arg3: i32) -> (i32, i32, i32) {
    %c0_i32 = arith.constant 0 : i32
    %c0_i32_0 = arith.constant 0 : i32
    return %arg0, %c0_i32, %arg2 : i32, i32, i32
  }
  func.func @transform_3(%arg0: i32, %arg1: i32, %arg2: i32, %arg3: i32) -> (i32, i32, i32) {
    %c0_i32 = arith.constant 0 : i32
    return %arg0, %arg1, %arg2 : i32, i32, i32
  }
}

</mosaic_0001>

<bundles_post_ra>
// kernel: tpu_custom_call.1
= control target key start
LH: loop header
LB: loop body
LE: loop exit
PB: predicated region body
PF: predicated region fallthrough
CT: control target
= control target key end

     0   :  { %8 = vsyncpa [#allocation4], 0  ;;  %s1057_s0 = inlined_call_operand.hbm [shape: bf16[16,32], index: 0, kind: input, shape index: {}]   ;;  %s1058_s1 = inlined_call_operand.hbm [shape: bf16[3,32,32], index: 1, kind: input, shape index: {}]   ;;  %s1059_s2 = inlined_call_operand.vmem [shape: f32[3,1,32], index: 2, kind: input, shape index: {}]   ;;  %s1060_s3 = inlined_call_operand.hbm [shape: bf16[3,16,32], index: 3, kind: output, shape index: {}]  }
   0x1   :  { %9 = vsyncpa [#allocation7], 0 }
   0x2   :  { %11 = vsyncpa [#allocation7 + $0x1], 0 }
   0x3   :  { %12 = vsyncpa [#allocation5], 0 }
   0x4   :  { %14 = vsyncpa [#allocation5 + $0x1], 0  ;;  %s823_s12 = smov 0   ;;  %s825_s13 = smov 0  }
   0x5   :  { %s827_s14 = smov 0   ;;  %s829_s15 = smov 0  }
   0x6   :  { %s831_s16 = smov 0   ;;  %s833_s17 = smov 0  }
   0x7 LB: > { %s527_s18 = sadd.s32 4294967295, %s792_s17   ;;  %s528_s19 = sadd.s32 4294967294, %s792_s17   ;;  %s792_s17 = sphi %s833_s17, %s20_s17   ;;  %s788_s16 = sphi %s831_s16, %s1083_s16   ;;  %s784_s15 = sphi %s829_s15, %s1082_s15   ;;  %s780_s14 = sphi %s827_s14, %s1081_s14   ;;  %s776_s13 = sphi %s825_s13, %s1080_s13   ;;  %s772_s12 = sphi %s823_s12, %s1079_s12  }
   0x8   : > { %p98_p0 = scmp.ne.s32.totalorder %s776_s13, %s772_s12  ;;  %p857_p1 = scmp.eq.s32.totalorder %s527_s18, 0 }
   0x9   : > { %p861_p2 = scmp.eq.s32.totalorder %s527_s18, 2  ;;  %p160_p3 = scmp.eq.s32.totalorder %s528_s19, 2 }
   0xa   : > { %s1065_s20 = scalar_select %p857_p1, 1, 0 }
   0xb   : > { %s1066_s21 = scalar_select %p861_p2, 1, 0 }
   0xc   : > { %p867_p4 = por %p857_p1, %p98_p0  ;;  %p529_p5 = scmp.ge.s32.totalorder %s792_s17, 1 }
   0xd   : > { %p872_p6 = por %p160_p3, %p98_p0  ;;  %p167_p7 = scmp.lt.s32.totalorder %s792_s17, 4 }
   0xe   : > { %s1067_s22 = scalar_select %p867_p4, 1, 0 }
   0xf   : > { %s1068_s23 = scalar_select %p872_p6, 1, 0 }
  0x10   : > { %p877_p8 = pnand %p529_p5, %p167_p7  ;;  %s794_s25 = smov [#allocation3]  }
  0x11   : > { %s183_s26 = sshll.u32 %s794_s25, 4  ;;  %s46_s28 = sadd.s32 1, %s788_s16  ;;  %s184_s26 = int_to_ptr.vmem [resolvable:$true] %s183_s26 }
  0x12   : > { %s1069_s24 = scalar_select %p877_p8, 1, 0 }
  0x13   : > { %p574_p9 = pneg %p877_p8  ;;  %s648_s4 = scalar_lea.hbm %s1057_s0, 128 }
  0x14   : > { %p649_p11 = scmp.ne.s32.totalorder %s1057_s0, %s648_s4  ;;  %p655_p3 = scmp.lt.u32.totalorder %s648_s4, %s1057_s0 }
  0x15   : > { %p885_p10 = pnand %p574_p9, %p857_p1 }
  0x17   : > { %p650_p12 = pneg %p885_p10 }
  0x19   : > { %p651_p13 = pnand %p650_p12, %p649_p11 }
  0x1b   : > { %p652_p0 = pneg %p651_p13 }
  0x1d   : > { %p657_p5 = pnand %p655_p3, %p652_p0 }
  0x1f   : > { %660 = shalt.err (!%p657_p5)
}
  0x20   : > { %s661_s9 = scalar_lea.vmem %s184_s26, 128  ;;  %p669_p4 = scmp.lt.s32.totalorder %s184_s26, %s184_s26 }
  0x21   : > { %p662_p7 = scmp.ne.s32.totalorder %s184_s26, %s661_s9  ;;  %p670_p1 = scmp.lt.s32.totalorder %s661_s9, %s661_s9 }
  0x23   : > { %p664_p9 = pnand %p662_p7, %p650_p12  ;;  %p671_p8 = por %p670_p1, %p669_p4 }
  0x25   : > { %p665_p6 = pneg %p664_p9 }
  0x27   : > { %p672_p2 = pnand %p671_p8, %p665_p6 }
  0x29   : > { %675 = shalt.err (!%p672_p2)
}
  0x2a   : > { %s795_s10 = smov 64   ;;  %s796_s11 = smov 4  }
  0x2b   : > { %577 = dma.hbm_to_vmem [thread:$0]  (!%p885_p10), %s1057_s0, 128, %s184_s26, [#allocation4], %s795_s10, %s795_s10, %s796_s11  }
  0x2c   : > { %p48_p1 = scmp.ge.s32.totalorder %s46_s28, 3  ;;  %s85_s25 = sadd.s32 1, %s780_s14 }
  0x2d   : > { %p92_p2 = scmp.ne.s32.totalorder %s780_s14, %s776_s13  ;;  %p93_p4 = scmp.eq.s32.totalorder %s792_s17, 0 }
  0x2e   : > { %s1085_s28 = smov (%p48_p1, %s46_s28), 0  ;;  %p1072_p8 = scmp.ne.s32.totalorder %s1066_s21, 0 }
  0x2f   : > { %p915_p6 = por %p93_p4, %p92_p2  ;;  %s78_s30 = ssub.s32 %s788_s16, %s1085_s28 }
  0x30   : > { %p921_p11 = por %p1072_p8, %p92_p2  ;;  %p587_p12 = scmp.lt.s32.totalorder %s792_s17, 3 }
  0x31   : > { %p83_p10 = scmp.eq.s32.totalorder %s78_s30, 0  ;;  %s197_s26 = sand.u32 1, %s780_s14  }
  0x32   : > { %s532_s4 = sshll.u32 %s197_s26, 4  ;;  %s551_s6 = sshll.u32 %s788_s16, 8 }
  0x33   : > { %s930_s5 = scalar_select %p83_p10, %s780_s14, %s85_s25  }
  0x34   : > { %s936_s9 = scalar_lea.hbm %s1058_s1, %s551_s6  ;;  %s201_s21 = scalar_lea.vmem [#allocation6], %s532_s4 }
  0x35   : > { %s211_s18 = sshll.u32 %s201_s21, 4  ;;  %p942_p13 = pnand %p587_p12, %p915_p6  ;;  %s938_s18 = int_to_ptr.vmem [resolvable:$true] %s211_s18 }
  0x36   : > { %s946_s25 = scalar_lea.sflag [#allocation7], %s197_s26  ;;  %s676_s30 = scalar_lea.hbm %s936_s9, 256 }
  0x37   : > { %p677_p0 = scmp.ne.s32.totalorder %s936_s9, %s676_s30  ;;  %p678_p3 = pneg %p942_p13 }
  0x38   : > { %s681_s29 = scalar_lea.hbm %s1058_s1, 768  ;;  %p682_p9 = scmp.lt.u32.totalorder %s936_s9, %s1058_s1 }
  0x39   : > { %p679_p5 = pnand %p678_p3, %p677_p0  ;;  %p683_p1 = scmp.lt.u32.totalorder %s681_s29, %s676_s30 }
  0x3a   : > { %p685_p4 = scmp.lt.u32.totalorder %s676_s30, %s936_s9 }
  0x3b   : > { %p680_p7 = pneg %p679_p5  ;;  %p684_p2 = por %p683_p1, %p682_p9 }
  0x3d   : > { %p686_p6 = por %p685_p4, %p684_p2 }
  0x3f   : > { %p687_p8 = pnand %p686_p6, %p680_p7 }
  0x41   : > { %690 = shalt.err (!%p687_p8)
}
  0x42   : > { %s691_s26 = scalar_lea.vmem %s938_s18, 256  ;;  %s797_s21 = smov [#allocation6]  }
  0x43   : > { %p692_p12 = scmp.ne.s32.totalorder %s938_s18, %s691_s26  ;;  %s696_s4 = sshll.u32 %s797_s21, 4  ;;  %s697_s4 = int_to_ptr.vmem [resolvable:$false] %s696_s4 }
  0x44   : > { %s698_s6 = scalar_lea.vmem %s697_s4, 512  ;;  %p699_p5 = scmp.lt.s32.totalorder %s938_s18, %s697_s4 }
  0x45   : > { %p694_p10 = pnand %p692_p12, %p678_p3  ;;  %p700_p9 = scmp.lt.s32.totalorder %s698_s6, %s691_s26 }
  0x47   : > { %p695_p0 = pneg %p694_p10  ;;  %p701_p1 = por %p700_p9, %p699_p5 }
  0x49   : > { %p702_p2 = pnand %p701_p1, %p695_p0 }
  0x4b   : > { %705 = shalt.err (!%p702_p2)
}
  0x4c   : > { %581 = dma.hbm_to_vmem [thread:$0]  (!%p942_p13), %s936_s9, 256, %s938_s18, %s946_s25, %s795_s10, %s795_s10, %s796_s11  }
  0x4d   : > { %p1075_p3 = scmp.ne.s32.totalorder %s1069_s24, 0 }
  0x4e   : > { %p1076_p7 = scmp.ne.s32.totalorder (!%p1075_p3), %s1065_s20, 0 }
  0x4f   : > { %232 = sbr.rel (%p1075_p3) target bundleno = 343 (0x157), region = 32 }
  0x56   : > { %759 = dma.done.wait (%p1076_p7), [#allocation4], 128  }
  0x57   : > { %761 = vsyncadd (%p1076_p7), [#allocation4], 4294967168  ;;  %s984_s30 = sand.u32 1, %s776_s13   ;;  %p1077_p4 = scmp.ne.s32.totalorder %s1067_s22, 0 }
  0x58   : > { %s537_s19 = sshll.u32 %s984_s30, 4  ;;  %s239_s29 = scalar_lea.sflag [#allocation7], %s984_s30 }
  0x59   : > { %s242_s7 = scalar_lea.vmem [#allocation6], %s537_s19 }
  0x5a   : > { %763 = dma.done.wait (%p1077_p4), %s239_s29, 256  }
  0x5b   : > { %765 = vsyncadd (%p1077_p4), %s239_s29, 4294967040  ;;  %vm285_vm0 = vcmask 261120   ;;  %v798_v0 = vmov 0.0   ;;  %vm799_vm1 = vmmov 0   ;;  %v645_v1 = vld [vmem:[%s242_s7] sm:$0xff]   ;;  %v646_v2 = vld [vmem:[%s242_s7 + $0x8] sm:$0xff]  }
  0x5c   : > { %558 = vmatprep.subr.bf16.mxu0 %v798_v0  ;;  %562 = vmatprep.mubr.msk.bf16.mxu0 %vm799_vm1, %v798_v0  ;;  %286 = vst.msk [vmem:[#allocation2] sm:$0xff] %vm285_vm0, %v798_v0  ;;  %287 = vst.msk [vmem:[#allocation2 + $0x8] sm:$0xff] %vm285_vm0, %v798_v0  ;;  %v647_v3 = vld [vmem:[#allocation3] sm:$0xff]   ;;  %p273_p13 = scmp.lt.s32.totalorder %s784_s15, 2  ;;  %s538_s22 = sshll.u32 %s984_s30, 3  ;;  %vm384_vm2 = vcmask 257024  }
  0x5d   : > { %559 = vmatpush3.bf16.msra.mxu0 %v645_v1  ;;  %s554_s9 = sshll.u32 %s784_s15, 7  ;;  %s270_s18 = scalar_lea.vmem [#allocation8], %s538_s22 }
  0x5e   : > { %560 = vmatprep.subr.bf16.mxu0 %v798_v0  ;;  %s274_s20 = scalar_select %p273_p13, %s784_s15, 2 }
  0x5f   : > { %s404_s25 = sshll.u32 %s270_s18, 4  ;;  %s1007_s21 = scalar_lea.hbm %s1060_s3, %s554_s9  ;;  %s1009_s25 = int_to_ptr.vmem [resolvable:$true] %s404_s25 }
  0x60   : > { %s278_s11 = scalar_lea.vmem %s1059_s2, %s274_s20  ;;  %s388_s15 = scalar_lea.sflag [#allocation5], %s984_s30 }
  0x61   : > { %561 = vmatpush3.bf16.msra.mxu0 %v646_v2  ;;  %v543_v12 = vld [vmem:[%s278_s11] ss:$0 sm:$0xff]  ;;  %s706_s4 = scalar_lea.vmem %s1009_s25, 128  ;;  %s800_s6 = smov [#allocation8]  }
  0x62   : > { %p707_p6 = scmp.ne.s32.totalorder %s1009_s25, %s706_s4  ;;  %s710_s19 = sshll.u32 %s800_s6, 4  ;;  %s711_s19 = int_to_ptr.vmem [resolvable:$false] %s710_s19 }
  0x63   : > { %v288_v4 = vld [vmem:[#allocation2] sm:$0xff]  ;;  %v289_v6 = vld [vmem:[#allocation2 + $0x8] sm:$0xff]  ;;  %s712_s29 = scalar_lea.vmem %s711_s19, 256  ;;  %p713_p10 = scmp.lt.s32.totalorder %s1009_s25, %s711_s19 }
  0x64   : > { %563 = vmatmul.mubr.msk.bf16.vlgmr.msra.gmra.mrb[0].mxu0 %vm285_vm0, %v647_v3  ;;  %p708_p8 = pnand %p707_p6, %p921_p11  ;;  %p714_p0 = scmp.lt.s32.totalorder %s712_s29, %s706_s4 }
  0x66   : > { %p709_p12 = pneg %p708_p8  ;;  %p715_p5 = por %p714_p0, %p713_p10 }
  0x68   : > { %p716_p9 = pnand %p715_p5, %p709_p12 }
 0x137   : > { %v351_v5 = vpop.f32.mrb[0].mxu0 }
 0x138   : > { %v358_v7 = vadd.f32 %v351_v5, %v288_v4  ;;  %v564_v8 = vpop.f32.mrb[1].mxu0 }
 0x139   : > { %v354_v9 = vpop.f32.mrb[2].mxu0 }
 0x13a   : > { %360 = vst.msk [vmem:[#allocation2] sm:$0xff] %vm285_vm0, %v358_v7  ;;  %v359_v10 = vadd.f32 %v354_v9, %v289_v6  ;;  %v565_v11 = vpop.f32.mrb[3].mxu0 }
 0x13c   : > { %361 = vst.msk [vmem:[#allocation2 + $0x8] sm:$0xff] %vm285_vm0, %v359_v10 }
 0x141   : > { %v365_v13 = vld [vmem:[#allocation2] sm:$0xff] }
 0x142   : > { %v374_v14 = vadd.f32 %v543_v12, %v365_v13 }
 0x143   : > { %v366_v15 = vld [vmem:[#allocation2 + $0x8] sm:$0xff] }
 0x144   : > { %v375_v16 = vadd.f32 %v543_v12, %v366_v15  ;;  %v552_v17 = vpack.c.bf16 %v374_v14, %v374_v14 }
 0x146   : > { %v553_v18 = vpack.c.bf16 %v375_v16, %v375_v16  ;;  %385 = vst.msk [vmem:[%s270_s18] sm:$0xf] %vm384_vm2, %v552_v17 }
 0x148   : > { %386 = vst.msk [vmem:[%s270_s18 + $0x4] sm:$0xf] %vm384_vm2, %v553_v18 }
 0x149   : > { %719 = shalt.err (!%p716_p9)
}
 0x14a   : > { %s720_s7 = scalar_lea.hbm %s1007_s21, 128  ;;  %s724_s24 = scalar_lea.hbm %s1060_s3, 384 }
 0x14b   : > { %p721_p1 = scmp.ne.s32.totalorder %s1007_s21, %s720_s7  ;;  %p725_p7 = scmp.lt.u32.totalorder %s1007_s21, %s1060_s3 }
 0x14c   : > { %p726_p4 = scmp.lt.u32.totalorder %s724_s24, %s720_s7  ;;  %p728_p6 = scmp.lt.u32.totalorder %s720_s7, %s1007_s21 }
 0x14d   : > { %p722_p2 = pnand %p721_p1, %p921_p11 }
 0x14e   : > { %p727_p13 = por %p726_p4, %p725_p7 }
 0x14f   : > { %p723_p3 = pneg %p722_p2 }
 0x150   : > { %p729_p8 = por %p728_p6, %p727_p13 }
 0x152   : > { %p730_p12 = pnand %p729_p8, %p723_p3 }
 0x154   : > { %733 = shalt.err (!%p730_p12)
}
 0x155   : > { %s801_s9 = smov 64   ;;  %s802_s18 = smov 4  }
 0x156   : > { %572 = dma.vmem_to_hbm [thread:$0]  (%p921_p11), %s1009_s25, 128, %s1007_s21, %s388_s15, %s801_s9, %s801_s9, %s802_s18  }
 0x157 PF: > { %p589_p10 = scmp.ge.s32.totalorder %s792_s17, 2  ;;  %s419_s8 = sand.u32 1, %s772_s12  }
 0x158   : > { %p1078_p0 = scmp.ne.s32.totalorder %s1068_s23, 0  ;;  %s420_s26 = scalar_lea.sflag [#allocation5], %s419_s8 }
 0x15a   : > { %p583_p5 = pnand %p589_p10, %p1078_p0 }
 0x15c   : > { %767 = dma.done.wait (!%p583_p5), %s420_s26, 128  }
 0x15d   : > { %769 = vsyncadd (!%p583_p5), %s420_s26, 4294967168  ;;  %s20_s17 = sadd.s32 1, %s792_s17   ;;  %s1079_s12 = smov %s776_s13 }
 0x15e   : > { %p17_p9 = scmp.ge.s32.totalorder %s20_s17, 5   ;;  %s1080_s13 = smov %s780_s14 }
 0x15f   : > { %s1081_s14 = smov %s930_s5  ;;  %s1082_s15 = smov %s788_s16 }
 0x160   : > { %s1083_s16 = smov %s1085_s28  ;;  %19 = sbr.rel (!%p17_p9) target bundleno = 7 (0x7), region = 94 }
 0x167   :  { %425 = vsyncpa [#allocation4], 1 }
 0x168   :  { %427 = vsyncpa [#allocation4 + $0x1], 1 }
 0x169   :  { %428 = vsyncpa [#allocation7], 1 }
 0x16a   :  { %430 = vsyncpa [#allocation7 + $0x1], 1 }
 0x16b   :  { %431 = vsyncpa [#allocation5], 1 }
 0x16c   :  { %433 = vsyncpa [#allocation5 + $0x1], 1 }

</bundles_post_ra>
